<compile_context>
chip_gen: v7x
topology: tpu7x:2x2x1
jax: 0.10.0
libtpu: 0.0.40
codegen_flags: <defaults>
</compile_context>

<pallas_src>
import functools

import jax
import jax.numpy as jnp
from jax.experimental import pallas as pl
from jax.experimental.pallas import tpu as pltpu


def _round_up(v, m):
    return ((v + m - 1) // m) * m


def _pad2d(a, rows, cols):
    r, c = a.shape
    return jnp.pad(a, ((0, rows - r), (0, cols - c)))


# ---------------------------------------------------------------------------
# Kernel 1: per-node projections (cheap, O(N * Fin * Fout)).
#   y = x @ W_self + b   (f32, consumed by the aggregation epilogue)
#   z = x @ W_neigh      (bf16, MXU operand of the aggregation kernel)
# ---------------------------------------------------------------------------
def _project_kernel(x_ref, ws_ref, wn_ref, b_ref, y_ref, z_ref):
    xv = x_ref[...]
    y = jnp.dot(xv, ws_ref[...], preferred_element_type=jnp.float32) + b_ref[...]
    z = jnp.dot(xv, wn_ref[...], preferred_element_type=jnp.float32)
    y_ref[...] = y.astype(y_ref.dtype)
    z_ref[...] = z.astype(z_ref.dtype)


def _project(x, w_self, w_neigh, bias, *, tm, tn, vmem_limit_bytes=None):
    """x: [Np, Fin_p] bf16, w_*: [Fin_p, Fout_p] bf16, bias: [1, Fout_p] f32."""
    n_p, f_in = x.shape
    f_out = w_self.shape[1]
    grid = (n_p // tm, f_out // tn)
    return pl.pallas_call(
        _project_kernel,
        out_shape=(jax.ShapeDtypeStruct((n_p, f_out), jnp.float32),
                   jax.ShapeDtypeStruct((n_p, f_out), jnp.bfloat16)),
        grid_spec=pltpu.PrefetchScalarGridSpec(
            num_scalar_prefetch=0,
            grid=grid,
            in_specs=[
                pl.BlockSpec((tm, f_in), lambda i, j: (i, 0)),   # x row tile
                pl.BlockSpec((f_in, tn), lambda i, j: (0, j)),   # W_self
                pl.BlockSpec((f_in, tn), lambda i, j: (0, j)),   # W_neigh
                pl.BlockSpec((1, tn), lambda i, j: (0, j)),      # bias
            ],
            out_specs=[pl.BlockSpec((tm, tn), lambda i, j: (i, j)),
                       pl.BlockSpec((tm, tn), lambda i, j: (i, j))],
        ),
        compiler_params=pltpu.CompilerParams(
            dimension_semantics=("parallel", "parallel"),
            vmem_limit_bytes=vmem_limit_bytes),
    )(x, w_self, w_neigh, bias)


# ---------------------------------------------------------------------------
# Kernel 2: neighbor aggregation + epilogue (dominant O(N^2 * Fout) work).
#   out[i, j] = adj[i, :] @ z[:, j] + y[i, j]   (+ optional ReLU)
# ---------------------------------------------------------------------------
def _aggregate_kernel(adj_ref, z_ref, y_ref, o_ref, acc_ref, *, apply_relu):
    k = pl.program_id(2)

    @pl.when(k == 0)
    def _():
        acc_ref[...] = jnp.zeros_like(acc_ref)

    # Sole op touching acc on non-final steps (MRB-friendly on v7x).
    acc_ref[...] += jnp.dot(adj_ref[...], z_ref[...],
                            preferred_element_type=jnp.float32)

    @pl.when(k == pl.num_programs(2) - 1)
    def _():
        out = acc_ref[...] + y_ref[...]
        if apply_relu:
            out = jnp.maximum(out, 0.0)
        o_ref[...] = out.astype(o_ref.dtype)


def _aggregate(adj, z, y, *, apply_relu, out_dtype, tm, tn, tk,
               vmem_limit_bytes=None):
    """adj: [Np, Np] bf16, z: [Np, Fout_p] bf16, y: [Np, Fout_p] f32."""
    n_p = adj.shape[0]
    f_out = z.shape[1]
    grid = (n_p // tm, f_out // tn, n_p // tk)

    flops = 2 * n_p * n_p * f_out
    bytes_accessed = (n_p * n_p * 2                      # adj, streamed once
                      + (n_p // tm) * n_p * f_out * 2    # z re-streamed per row tile
                      + n_p * f_out * 4                  # y (f32)
                      + n_p * f_out * jnp.dtype(out_dtype).itemsize)

    kernel = functools.partial(_aggregate_kernel, apply_relu=apply_relu)
    return pl.pallas_call(
        kernel,
        out_shape=jax.ShapeDtypeStruct((n_p, f_out), out_dtype),
        grid_spec=pltpu.PrefetchScalarGridSpec(
            num_scalar_prefetch=0,
            grid=grid,
            in_specs=[
                pl.BlockSpec((tm, tk), lambda i, j, k: (i, k)),   # adj tile
                pl.BlockSpec((tk, tn), lambda i, j, k: (k, j)),   # z = x @ W_neigh
                pl.BlockSpec((tm, tn), lambda i, j, k: (i, j)),   # y (k-resident)
            ],
            out_specs=pl.BlockSpec((tm, tn), lambda i, j, k: (i, j)),
            scratch_shapes=[pltpu.VMEM((tm, tn), jnp.float32)],
        ),
        compiler_params=pltpu.CompilerParams(
            dimension_semantics=("parallel", "parallel", "arbitrary"),
            vmem_limit_bytes=vmem_limit_bytes),
        cost_estimate=pl.CostEstimate(flops=flops, transcendentals=0,
                                      bytes_accessed=bytes_accessed),
    )(adj, z, y)


def graphsage_forward(x, adj, w1, b1, w2, b2, *, block_nodes=512,
                      block_feat=512, vmem_limit_bytes=None):
    """x: [N, Fin], adj: [N, N].
    w1: [H, 2*Fin], b1: [H]   (torch nn.Linear layout)
    w2: [Fout, 2*H], b2: [Fout]
    """
    n, fin = x.shape
    hdim = w1.shape[0]
    fout = w2.shape[0]

    # Node tile: up to block_nodes, but never larger than the 128-rounded graph.
    tmn = min(block_nodes, _round_up(n, 128))
    n_p = _round_up(n, tmn)
    fin_p = _round_up(fin, 128)
    h_p = _round_up(hdim, 128)
    fout_p = _round_up(fout, 128)
    tn1 = min(block_feat, h_p)      # feature tile, layer 1
    tn2 = min(block_feat, fout_p)   # feature tile, layer 2

    # bf16 MXU operands (f32 accumulation inside the kernels). Zero padding of
    # rows/features leaves the real outputs unchanged (padded adj rows/cols = 0).
    x_p = _pad2d(x, n_p, fin_p).astype(jnp.bfloat16)
    # TODO(synk): on v7x optionally cast adj to fp8 e4m3 to halve the dominant HBM stream.
    adj_p = _pad2d(adj, n_p, n_p).astype(jnp.bfloat16)

    # Split torch Linear weight [out, 2*in] into self / neighbor halves
    # (concat([x, adj@x]) puts x first), transpose to [in, out], pad to 128.
    w1s = _pad2d(jnp.transpose(w1[:, :fin]), fin_p, h_p).astype(jnp.bfloat16)
    w1n = _pad2d(jnp.transpose(w1[:, fin:]), fin_p, h_p).astype(jnp.bfloat16)
    w2s = _pad2d(jnp.transpose(w2[:, :hdim]), h_p, fout_p).astype(jnp.bfloat16)
    w2n = _pad2d(jnp.transpose(w2[:, hdim:]), h_p, fout_p).astype(jnp.bfloat16)
    b1p = jnp.pad(b1, (0, h_p - hdim)).reshape(1, h_p).astype(jnp.float32)
    b2p = jnp.pad(b2, (0, fout_p - fout)).reshape(1, fout_p).astype(jnp.float32)

    # Layer 1: h = relu(x @ W1s + b1 + adj @ (x @ W1n)); bf16 (layer-2 MXU operand).
    y1, z1 = _project(x_p, w1s, w1n, b1p, tm=tmn, tn=tn1,
                      vmem_limit_bytes=vmem_limit_bytes)
    h = _aggregate(adj_p, z1, y1, apply_relu=True, out_dtype=jnp.bfloat16,
                   tm=tmn, tn=tn1, tk=tmn, vmem_limit_bytes=vmem_limit_bytes)

    # Layer 2: out = h @ W2s + b2 + adj @ (h @ W2n); f32 output.
    y2, z2 = _project(h, w2s, w2n, b2p, tm=tmn, tn=tn2,
                      vmem_limit_bytes=vmem_limit_bytes)
    out = _aggregate(adj_p, z2, y2, apply_relu=False, out_dtype=jnp.float32,
                     tm=tmn, tn=tn2, tk=tmn, vmem_limit_bytes=vmem_limit_bytes)
    return out[:n, :fout]


def _reference(x, adj, w1, b1, w2, b2):
    # Pure-JAX replica of the PyTorch module (f32 throughout).
    agg = adj @ x
    h = jnp.concatenate([x, agg], axis=1) @ w1.T + b1
    h = jnp.maximum(h, 0.0)
    agg2 = adj @ h
    return jnp.concatenate([h, agg2], axis=1) @ w2.T + b2


if __name__ == "__main__":
    key = jax.random.PRNGKey(0)

    def linear_init(kw, kb, fan_in, fan_out):
        bound = 1.0 / jnp.sqrt(jnp.float32(fan_in))
        w = jax.random.uniform(kw, (fan_out, fan_in), jnp.float32, -bound, bound)
        b = jax.random.uniform(kb, (fan_out,), jnp.float32, -bound, bound)
        return w, b

    # ---- Test 1: the exact module spec (N=5, Fin=3, H=8, Fout=2, adj=I) ----
    num_nodes, in_features, hidden_features, out_features = 5, 3, 8, 2
    kx, kw1, kb1, kw2, kb2, key = jax.random.split(key, 6)
    x = jax.random.uniform(kx, (num_nodes, in_features), dtype=jnp.float32)
    adj = jnp.eye(num_nodes, dtype=jnp.float32)
    w1, b1 = linear_init(kw1, kb1, 2 * in_features, hidden_features)
    w2, b2 = linear_init(kw2, kb2, 2 * hidden_features, out_features)

    out = jax.block_until_ready(graphsage_forward(x, adj, w1, b1, w2, b2))
    ref = _reference(x, adj, w1, b1, w2, b2)
    assert out.shape == (num_nodes, out_features)
    err1 = float(jnp.max(jnp.abs(out - ref)))
    assert jnp.allclose(out, ref, atol=2e-2, rtol=2e-2), f"test1 max err {err1}"

    # ---- Test 2: tile/padding-exercising shapes, random row-normalized adj --
    n2, fin2, h2, fo2 = 300, 16, 32, 8
    ka, kx2, kw1b, kb1b, kw2b, kb2b = jax.random.split(key, 6)
    x2 = jax.random.uniform(kx2, (n2, fin2), dtype=jnp.float32)
    a = (jax.random.uniform(ka, (n2, n2)) < 0.1).astype(jnp.float32)
    a = a + jnp.eye(n2, dtype=jnp.float32)               # self loops
    adj2 = a / jnp.sum(a, axis=1, keepdims=True)         # mean aggregator
    w1b, b1b = linear_init(kw1b, kb1b, 2 * fin2, h2)
    w2b, b2b = linear_init(kw2b, kb2b, 2 * h2, fo2)

    out2 = jax.block_until_ready(
        graphsage_forward(x2, adj2, w1b, b1b, w2b, b2b))
    ref2 = _reference(x2, adj2, w1b, b1b, w2b, b2b)
    assert out2.shape == (n2, fo2)
    err2 = float(jnp.max(jnp.abs(out2 - ref2)))
    assert jnp.allclose(out2, ref2, atol=5e-2, rtol=5e-2), f"test2 max err {err2}"

    print("KERNEL_OK")
</pallas_src>

<mosaic_0001>
module attributes {stable_mosaic.version = 11 : i64} {
  func.func @_project_kernel(%arg0: i32, %arg1: i32, %arg2: memref<128x128xbf16, #tpu.memory_space<vmem>>, %arg3: memref<128x128xbf16, #tpu.memory_space<vmem>>, %arg4: memref<128x128xbf16, #tpu.memory_space<vmem>>, %arg5: memref<1x128xf32, #tpu.memory_space<vmem>>, %arg6: memref<128x128xf32, #tpu.memory_space<vmem>>, %arg7: memref<128x128xbf16, #tpu.memory_space<vmem>>) attributes {dimension_semantics = [#tpu.dimension_semantics<parallel>, #tpu.dimension_semantics<parallel>], iteration_bounds = array<i64: 1, 1>, scalar_prefetch = 0 : i64, scratch_operands = 0 : i64, tpu.core_type = #tpu.core_type<tc>, window_params = [{transform_indices = @transform_0, window_bounds = array<i64: 128, 128>}, {transform_indices = @transform_1, window_bounds = array<i64: 128, 128>}, {transform_indices = @transform_2, window_bounds = array<i64: 128, 128>}, {transform_indices = @transform_3, window_bounds = array<i64: 1, 128>}, {transform_indices = @transform_4, window_bounds = array<i64: 128, 128>}, {transform_indices = @transform_5, window_bounds = array<i64: 128, 128>}]} {
    %c0 = arith.constant 0 : index
    %c0_0 = arith.constant 0 : index
    %0 = vector.load %arg2[%c0, %c0_0] : memref<128x128xbf16, #tpu.memory_space<vmem>>, vector<128x128xbf16>
    %c0_1 = arith.constant 0 : index
    %c0_2 = arith.constant 0 : index
    %1 = vector.load %arg3[%c0_1, %c0_2] : memref<128x128xbf16, #tpu.memory_space<vmem>>, vector<128x128xbf16>
    %cst = arith.constant dense<0.000000e+00> : vector<128x128xf32>
    %2 = tpu.matmul %0, %1, %cst {dimension_numbers = #tpu.dot_dimension_numbers<[1], [0], [0], [1], [0, 0, 1, 1], [], []>} : vector<128x128xbf16>, vector<128x128xbf16>, vector<128x128xf32> -> vector<128x128xf32>
    %c0_3 = arith.constant 0 : index
    %c0_4 = arith.constant 0 : index
    %3 = vector.load %arg5[%c0_3, %c0_4] : memref<1x128xf32, #tpu.memory_space<vmem>>, vector<1x128xf32>
    %4 = vector.broadcast %3 : vector<1x128xf32> to vector<128x128xf32>
    %5 = arith.addf %2, %4 : vector<128x128xf32>
    %c0_5 = arith.constant 0 : index
    %c0_6 = arith.constant 0 : index
    %6 = vector.load %arg4[%c0_5, %c0_6] : memref<128x128xbf16, #tpu.memory_space<vmem>>, vector<128x128xbf16>
    %cst_7 = arith.constant dense<0.000000e+00> : vector<128x128xf32>
    %7 = tpu.matmul %0, %6, %cst_7 {dimension_numbers = #tpu.dot_dimension_numbers<[1], [0], [0], [1], [0, 0, 1, 1], [], []>} : vector<128x128xbf16>, vector<128x128xbf16>, vector<128x128xf32> -> vector<128x128xf32>
    %c0_8 = arith.constant 0 : index
    %c0_9 = arith.constant 0 : index
    %8 = vector.load %arg6[%c0_8, %c0_9] : memref<128x128xf32, #tpu.memory_space<vmem>>, vector<128x128xf32>
    tpu.vector_store %arg6[%c0_8, %c0_9], %5 {strides = array<i32>} : memref<128x128xf32, #tpu.memory_space<vmem>>, vector<128x128xf32>,
    %9 = arith.truncf %7 : vector<128x128xf32> to vector<128x128xbf16>
    %c0_10 = arith.constant 0 : index
    %c0_11 = arith.constant 0 : index
    %10 = vector.load %arg7[%c0_10, %c0_11] : memref<128x128xbf16, #tpu.memory_space<vmem>>, vector<128x128xbf16>
    tpu.vector_store %arg7[%c0_10, %c0_11], %9 {strides = array<i32>} : memref<128x128xbf16, #tpu.memory_space<vmem>>, vector<128x128xbf16>,
    return
  }
  func.func @transform_0(%arg0: i32, %arg1: i32) -> (i32, i32) {
    %c0_i32 = arith.constant 0 : i32
    %c0_i32_0 = arith.constant 0 : i32
    return %arg0, %c0_i32 : i32, i32
  }
  func.func @transform_1(%arg0: i32, %arg1: i32) -> (i32, i32) {
    %c0_i32 = arith.constant 0 : i32
    %c0_i32_0 = arith.constant 0 : i32
    return %c0_i32, %arg1 : i32, i32
  }
  func.func @transform_2(%arg0: i32, %arg1: i32) -> (i32, i32) {
    %c0_i32 = arith.constant 0 : i32
    %c0_i32_0 = arith.constant 0 : i32
    return %c0_i32, %arg1 : i32, i32
  }
  func.func @transform_3(%arg0: i32, %arg1: i32) -> (i32, i32) {
    %c0_i32 = arith.constant 0 : i32
    %c0_i32_0 = arith.constant 0 : i32
    return %c0_i32, %arg1 : i32, i32
  }
  func.func @transform_4(%arg0: i32, %arg1: i32) -> (i32, i32) {
    %c0_i32 = arith.constant 0 : i32
    return %arg0, %arg1 : i32, i32
  }
  func.func @transform_5(%arg0: i32, %arg1: i32) -> (i32, i32) {
    %c0_i32 = arith.constant 0 : i32
    return %arg0, %arg1 : i32, i32
  }
}

</mosaic_0001>

<bundles_post_ra>
// kernel: tpu_custom_call.1
= control target key start
LH: loop header
LB: loop body
LE: loop exit
PB: predicated region body
PF: predicated region fallthrough
CT: control target
= control target key end

     0   :  { %11 = vsyncpa [#allocation3], 0  ;;  %s1083_s0 = inlined_call_operand.hbm [shape: bf16[128,128], index: 0, kind: input, shape index: {}]   ;;  %s1084_s1 = inlined_call_operand.hbm [shape: bf16[128,128], index: 1, kind: input, shape index: {}]   ;;  %s1085_s2 = inlined_call_operand.hbm [shape: bf16[128,128], index: 2, kind: input, shape index: {}]   ;;  %s1086_s3 = inlined_call_operand.vmem [shape: f32[1,128], index: 3, kind: input, shape index: {}]   ;;  %s1087_s4 = inlined_call_operand.hbm [shape: f32[128,128], index: 4, kind: output, shape index: {0}]   ;;  %s1088_s5 = inlined_call_operand.hbm [shape: bf16[128,128], index: 5, kind: output, shape index: {1}]  }
   0x1   :  { %12 = vsyncpa [#allocation6], 0 }
   0x2   :  { %13 = vsyncpa [#allocation4], 0 }
   0x3   :  { %14 = vsyncpa [#allocation10], 0  ;;  %s937_s18 = smov [#allocation5]   ;;  %s938_s20 = smov [#allocation2]  }
   0x4   :  { %s32_s19 = sshll.u32 %s937_s18, 4  ;;  %s20_s21 = sshll.u32 %s938_s20, 4  ;;  %s33_s19 = int_to_ptr.vmem [resolvable:$true] %s32_s19  ;;  %s976_s21 = int_to_ptr.vmem [resolvable:$true] %s20_s21 }
   0x5   :  { %s819_s24 = scalar_lea.hbm %s1084_s1, 1024 }
   0x6   :  { %p820_p0 = scmp.ne.s32.totalorder %s1084_s1, %s819_s24  ;;  %p823_p1 = scmp.lt.u32.totalorder %s819_s24, %s1084_s1 }
   0x8   :  { %p825_p2 = pnand %p823_p1, %p820_p0 }
   0xa   :  { %828 = shalt.err (!%p825_p2)
}
   0xb   :  { %s829_s29 = scalar_lea.vmem %s33_s19, 1024  ;;  %p834_p4 = scmp.lt.s32.totalorder %s33_s19, %s33_s19 }
   0xc   :  { %p830_p3 = scmp.ne.s32.totalorder %s33_s19, %s829_s29  ;;  %p835_p5 = scmp.lt.s32.totalorder %s829_s29, %s829_s29 }
   0xe   :  { %p836_p6 = por %p835_p5, %p834_p4 }
  0x10   :  { %p837_p7 = pnand %p836_p6, %p830_p3 }
  0x12   :  { %840 = shalt.err (!%p837_p7)
}
  0x13   :  { %s939_s30 = smov 64   ;;  %s940_s6 = smov 4  }
  0x14   :  { %38 = dma.hbm_to_vmem [thread:$0]  %s1084_s1, 1024, %s33_s19, [#allocation6], %s939_s30, %s939_s30, %s940_s6  }
  0x15   :  { %s841_s11 = scalar_lea.hbm %s1083_s0, 1024 }
  0x16   :  { %p842_p8 = scmp.ne.s32.totalorder %s1083_s0, %s841_s11  ;;  %p845_p9 = scmp.lt.u32.totalorder %s841_s11, %s1083_s0 }
  0x18   :  { %p847_p10 = pnand %p845_p9, %p842_p8 }
  0x1a   :  { %850 = shalt.err (!%p847_p10)
}
  0x1b   :  { %s851_s16 = scalar_lea.vmem %s976_s21, 1024  ;;  %p856_p12 = scmp.lt.s32.totalorder %s976_s21, %s976_s21 }
  0x1c   :  { %p852_p11 = scmp.ne.s32.totalorder %s976_s21, %s851_s16  ;;  %p857_p13 = scmp.lt.s32.totalorder %s851_s16, %s851_s16 }
  0x1e   :  { %p858_p0 = por %p857_p13, %p856_p12 }
  0x20   :  { %p859_p1 = pnand %p858_p0, %p852_p11 }
  0x22   :  { %862 = shalt.err (!%p859_p1)
}
  0x23   :  { %26 = dma.hbm_to_vmem [thread:$0]  %s1083_s0, 1024, %s976_s21, [#allocation3], %s939_s30, %s939_s30, %s940_s6  }
  0x24   :  { %s941_s18 = smov [#allocation7]   ;;  %s863_s23 = scalar_lea.hbm %s1085_s2, 1024 }
  0x25   :  { %s44_s19 = sshll.u32 %s941_s18, 4  ;;  %p864_p2 = scmp.ne.s32.totalorder %s1085_s2, %s863_s23  ;;  %s45_s19 = int_to_ptr.vmem [resolvable:$true] %s44_s19 }
  0x26   :  { %p867_p3 = scmp.lt.u32.totalorder %s863_s23, %s1085_s2 }
  0x28   :  { %p869_p4 = pnand %p867_p3, %p864_p2 }
  0x2a   :  { %872 = shalt.err (!%p869_p4)
}
  0x2b   :  { %s873_s28 = scalar_lea.vmem %s45_s19, 1024  ;;  %p878_p6 = scmp.lt.s32.totalorder %s45_s19, %s45_s19 }
  0x2c   :  { %p874_p5 = scmp.ne.s32.totalorder %s45_s19, %s873_s28  ;;  %p879_p7 = scmp.lt.s32.totalorder %s873_s28, %s873_s28 }
  0x2e   :  { %p880_p8 = por %p879_p7, %p878_p6 }
  0x30   :  { %p881_p9 = pnand %p880_p8, %p874_p5 }
  0x32   :  { %884 = shalt.err (!%p881_p9)
}
  0x33   :  { %50 = dma.hbm_to_vmem [thread:$0]  %s1085_s2, 1024, %s45_s19, [#allocation6], %s939_s30, %s939_s30, %s940_s6  }
  0x34   :  { %929 = dma.done.wait [#allocation3], 1024  }
  0x35   :  { %930 = vsyncadd [#allocation3], 4294966272 }
  0x36   :  { %931 = dma.done.wait [#allocation6], 2048  }
  0x37   :  { %932 = vsyncadd [#allocation6], 4294965248  ;;  %v795_v0 = vld [vmem:[#allocation5] sm:$0xff]   ;;  %v797_v2 = vld [vmem:[#allocation5 + $0x8] sm:$0xff]   ;;  %s943_s8 = smov [#allocation9]  }
  0x38   :  { %v796_v1 = vld [vmem:[#allocation7] sm:$0xff]   ;;  %722 = vmatprep.subr.bf16.mxu0 %v795_v0  ;;  %v798_v3 = vld [vmem:[#allocation7 + $0x8] sm:$0xff]   ;;  %v799_v4 = vld [vmem:[#allocation5 + $0x10] sm:$0xff]   ;;  %s569_s9 = sshll.u32 %s943_s8, 4  ;;  %s1049_s9 = int_to_ptr.vmem [resolvable:$true] %s569_s9 }
  0x39   :  { %754 = vmatprep.subr.bf16.mxu1 %v796_v1  ;;  %723 = vmatpush3.bf16.msra.mxu0 %v795_v0  ;;  %v800_v5 = vld [vmem:[#allocation7 + $0x10] sm:$0xff]   ;;  %v801_v6 = vld [vmem:[#allocation5 + $0x18] sm:$0xff]   ;;  %v803_v8 = vld [vmem:[#allocation5 + $0x20] sm:$0xff]  }
  0x3a   :  { %755 = vmatpush3.bf16.msra.mxu1 %v796_v1  ;;  %724 = vmatprep.subr.bf16.mxu0 %v797_v2  ;;  %v802_v7 = vld [vmem:[#allocation7 + $0x18] sm:$0xff]   ;;  %v804_v9 = vld [vmem:[#allocation7 + $0x20] sm:$0xff]   ;;  %v805_v10 = vld [vmem:[#allocation5 + $0x28] sm:$0xff]  }
  0x3b   :  { %756 = vmatprep.subr.bf16.mxu1 %v798_v3  ;;  %v811_v11 = vld [vmem:[#allocation2] sm:$0xff]   ;;  %v806_v12 = vld [vmem:[#allocation7 + $0x28] sm:$0xff]   ;;  %v807_v13 = vld [vmem:[#allocation5 + $0x30] sm:$0xff]  }
  0x3c   :  { %738 = vmatprep.mubr.bf16.mxu0 %v811_v11  ;;  %770 = vmatprep.mubr.bf16.mxu1 %v811_v11  ;;  %v808_v14 = vld [vmem:[#allocation7 + $0x30] sm:$0xff]   ;;  %v809_v15 = vld [vmem:[#allocation5 + $0x38] sm:$0xff]   ;;  %v812_v17 = vld [vmem:[#allocation2 + $0x8] sm:$0xff]  }
  0x3d   :  { %725 = vmatpush3.bf16.msra.mxu0 %v797_v2  ;;  %v810_v16 = vld [vmem:[#allocation7 + $0x38] sm:$0xff]   ;;  %v813_v18 = vld [vmem:[#allocation2 + $0x10] sm:$0xff]   ;;  %v815_v20 = vld [vmem:[#allocation2 + $0x20] sm:$0xff]  }
  0x3e   :  { %757 = vmatpush3.bf16.msra.mxu1 %v798_v3  ;;  %726 = vmatprep.subr.bf16.mxu0 %v799_v4  ;;  %v814_v19 = vld [vmem:[#allocation2 + $0x18] sm:$0xff]   ;;  %v816_v21 = vld [vmem:[#allocation2 + $0x28] sm:$0xff]   ;;  %v817_v22 = vld [vmem:[#allocation2 + $0x30] sm:$0xff]  }
  0x3f   :  { %758 = vmatprep.subr.bf16.mxu1 %v800_v5  ;;  %v818_v23 = vld [vmem:[#allocation2 + $0x38] sm:$0xff]   ;;  %v1031_v24 = vld [vmem:[%s1086_s3] ss:$0 sm:$0xff]  ;;  %s942_s3 = smov [#allocation8]  }
  0x40   :  { %s557_s7 = sshll.u32 %s942_s3, 4  ;;  %s558_s7 = int_to_ptr.vmem [resolvable:$true] %s557_s7 }
  0x41   :  { %727 = vmatpush3.bf16.msra.mxu0 %v799_v4  ;;  %s885_s10 = scalar_lea.vmem %s558_s7, 2048  ;;  %p890_p11 = scmp.lt.s32.totalorder %s558_s7, %s558_s7 }
  0x42   :  { %759 = vmatpush3.bf16.msra.mxu1 %v800_v5  ;;  %728 = vmatprep.subr.bf16.mxu0 %v801_v6  ;;  %p886_p10 = scmp.ne.s32.totalorder %s558_s7, %s885_s10  ;;  %p891_p12 = scmp.lt.s32.totalorder %s885_s10, %s885_s10 }
  0x43   :  { %760 = vmatprep.subr.bf16.mxu1 %v802_v7 }
  0x44   :  { %p892_p13 = por %p891_p12, %p890_p11 }
  0x45   :  { %729 = vmatpush3.bf16.msra.mxu0 %v801_v6 }
  0x46   :  { %761 = vmatpush3.bf16.msra.mxu1 %v802_v7  ;;  %730 = vmatprep.subr.bf16.mxu0 %v803_v8  ;;  %p893_p0 = pnand %p892_p13, %p886_p10 }
  0x47   :  { %762 = vmatprep.subr.bf16.mxu1 %v804_v9 }
  0x49   :  { %731 = vmatpush3.bf16.msra.mxu0 %v803_v8 }
  0x4a   :  { %763 = vmatpush3.bf16.msra.mxu1 %v804_v9  ;;  %732 = vmatprep.subr.bf16.mxu0 %v805_v10 }
  0x4b   :  { %764 = vmatprep.subr.bf16.mxu1 %v806_v12 }
  0x4d   :  { %733 = vmatpush3.bf16.msra.mxu0 %v805_v10 }
  0x4e   :  { %765 = vmatpush3.bf16.msra.mxu1 %v806_v12  ;;  %734 = vmatprep.subr.bf16.mxu0 %v807_v13 }
  0x4f   :  { %766 = vmatprep.subr.bf16.mxu1 %v808_v14 }
  0x51   :  { %735 = vmatpush3.bf16.msra.mxu0 %v807_v13 }
  0x52   :  { %767 = vmatpush3.bf16.msra.mxu1 %v808_v14  ;;  %736 = vmatprep.subr.bf16.mxu0 %v809_v15 }
  0x53   :  { %768 = vmatprep.subr.bf16.mxu1 %v810_v16 }
  0x55   :  { %737 = vmatpush3.bf16.msra.mxu0 %v809_v15 }
  0x56   :  { %769 = vmatpush3.bf16.msra.mxu1 %v810_v16 }
  0x58   :  { %739 = vmatmul.mubr.bf16.vlgmr.msra.gmra.mrb[0].mxu0 %v812_v17 }
  0x59   :  { %771 = vmatmul.mubr.bf16.vlgmr.msra.gmra.mrb[0].mxu1 %v812_v17  ;;  %742 = vmatprep.mubr.bf16.mxu0 %v813_v18 }
  0x5a   :  { %774 = vmatprep.mubr.bf16.mxu1 %v813_v18 }
  0x60   :  { %743 = vmatmul.mubr.bf16.gmra.mrb[4].mxu0 %v814_v19 }
  0x61   :  { %775 = vmatmul.mubr.bf16.gmra.mrb[4].mxu1 %v814_v19  ;;  %746 = vmatprep.mubr.bf16.mxu0 %v815_v20 }
  0x62   :  { %778 = vmatprep.mubr.bf16.mxu1 %v815_v20 }
  0x68   :  { %747 = vmatmul.mubr.bf16.gmra.mrb[8].mxu0 %v816_v21 }
  0x69   :  { %779 = vmatmul.mubr.bf16.gmra.mrb[8].mxu1 %v816_v21  ;;  %750 = vmatprep.mubr.bf16.mxu0 %v817_v22 }
  0x6a   :  { %782 = vmatprep.mubr.bf16.mxu1 %v817_v22 }
  0x70   :  { %751 = vmatmul.mubr.bf16.gmra.mrb[12].mxu0 %v818_v23 }
  0x71   :  { %783 = vmatmul.mubr.bf16.gmra.mrb[12].mxu1 %v818_v23 }
 0x12b   :  { %v740_v25 = vpop.f32.mrb[0].mxu0 }
 0x12c   :  { %v241_v26 = vadd.f32 %v740_v25, %v1031_v24  ;;  %v772_v27 = vpop.f32.mrb[0].mxu1  ;;  %v232_v28 = vpop.f32.mrb[1].mxu0 }
 0x12d   :  { %v233_v29 = vadd.f32 %v1031_v24, %v232_v28  ;;  %v393_v30 = vpop.f32.mrb[1].mxu1  ;;  %v741_v31 = vpop.f32.mrb[2].mxu0 }
 0x12e   :  { %458 = vst [vmem:[#allocation8 + $0x10] sm:$0xff] %v241_v26  ;;  %v244_v32 = vadd.f32 %v741_v31, %v1031_v24  ;;  %v773_v33 = vpop.f32.mrb[2].mxu1  ;;  %v235_v34 = vpop.f32.mrb[3].mxu0 }
 0x12f   :  { %456 = vst [vmem:[#allocation8] sm:$0xff] %v233_v29  ;;  %v651_v35 = vpack.c.bf16 %v773_v33, %v772_v27  ;;  %v236_v36 = vadd.f32 %v1031_v24, %v235_v34  ;;  %v396_v37 = vpop.f32.mrb[3].mxu1 }
 0x130   :  { %459 = vst [vmem:[#allocation8 + $0x18] sm:$0xff] %v244_v32  ;;  %v646_v38 = vpack.c.bf16 %v396_v37, %v393_v30 }
 0x131   :  { %683 = vst [vmem:[#allocation9 + $0x8] sm:$0xff] %v651_v35   ;;  %457 = vst [vmem:[#allocation8 + $0x8] sm:$0xff] %v236_v36 }
 0x132   :  { %647 = vst [vmem:[#allocation9] sm:$0xff] %v646_v38  }
 0x133   :  { %v744_v39 = vpop.f32.mrb[4].mxu0 }
 0x134   :  { %v257_v40 = vadd.f32 %v744_v39, %v1031_v24  ;;  %v776_v41 = vpop.f32.mrb[4].mxu1  ;;  %v248_v42 = vpop.f32.mrb[5].mxu0 }
 0x135   :  { %v249_v43 = vadd.f32 %v1031_v24, %v248_v42  ;;  %v409_v44 = vpop.f32.mrb[5].mxu1  ;;  %v745_v45 = vpop.f32.mrb[6].mxu0 }
 0x136   :  { %462 = vst [vmem:[#allocation8 + $0x30] sm:$0xff] %v257_v40  ;;  %v260_v46 = vadd.f32 %v745_v45, %v1031_v24  ;;  %v777_v47 = vpop.f32.mrb[6].mxu1  ;;  %v251_v48 = vpop.f32.mrb[7].mxu0 }
 0x137   :  { %460 = vst [vmem:[#allocation8 + $0x20] sm:$0xff] %v249_v43  ;;  %v661_v49 = vpack.c.bf16 %v777_v47, %v776_v41  ;;  %v252_v50 = vadd.f32 %v1031_v24, %v251_v48  ;;  %v412_v51 = vpop.f32.mrb[7].mxu1 }
 0x138   :  { %463 = vst [vmem:[#allocation8 + $0x38] sm:$0xff] %v260_v46  ;;  %v656_v52 = vpack.c.bf16 %v412_v51, %v409_v44 }
 0x139   :  { %685 = vst [vmem:[#allocation9 + $0x18] sm:$0xff] %v661_v49   ;;  %461 = vst [vmem:[#allocation8 + $0x28] sm:$0xff] %v252_v50 }
 0x13a   :  { %684 = vst [vmem:[#allocation9 + $0x10] sm:$0xff] %v656_v52  }
 0x13b   :  { %v748_v53 = vpop.f32.mrb[8].mxu0 }
 0x13c   :  { %v273_v54 = vadd.f32 %v748_v53, %v1031_v24  ;;  %v780_v55 = vpop.f32.mrb[8].mxu1  ;;  %v264_v56 = vpop.f32.mrb[9].mxu0 }
 0x13d   :  { %v265_v57 = vadd.f32 %v1031_v24, %v264_v56  ;;  %v425_v58 = vpop.f32.mrb[9].mxu1  ;;  %v749_v59 = vpop.f32.mrb[10].mxu0 }
 0x13e   :  { %466 = vst [vmem:[#allocation8 + $0x50] sm:$0xff] %v273_v54  ;;  %v276_v60 = vadd.f32 %v749_v59, %v1031_v24  ;;  %v781_v61 = vpop.f32.mrb[10].mxu1  ;;  %v267_v62 = vpop.f32.mrb[11].mxu0 }
 0x13f   :  { %464 = vst [vmem:[#allocation8 + $0x40] sm:$0xff] %v265_v57  ;;  %v671_v63 = vpack.c.bf16 %v781_v61, %v780_v55  ;;  %v268_v0 = vadd.f32 %v1031_v24, %v267_v62  ;;  %v428_v1 = vpop.f32.mrb[11].mxu1 }
 0x140   :  { %467 = vst [vmem:[#allocation8 + $0x58] sm:$0xff] %v276_v60  ;;  %v666_v2 = vpack.c.bf16 %v428_v1, %v425_v58 }
 0x141   :  { %687 = vst [vmem:[#allocation9 + $0x28] sm:$0xff] %v671_v63   ;;  %465 = vst [vmem:[#allocation8 + $0x48] sm:$0xff] %v268_v0 }
 0x142   :  { %686 = vst [vmem:[#allocation9 + $0x20] sm:$0xff] %v666_v2  }
 0x143   :  { %v752_v3 = vpop.f32.mrb[12].mxu0 }
 0x144   :  { %v289_v4 = vadd.f32 %v752_v3, %v1031_v24  ;;  %v784_v5 = vpop.f32.mrb[12].mxu1  ;;  %v280_v6 = vpop.f32.mrb[13].mxu0 }
 0x145   :  { %v281_v7 = vadd.f32 %v1031_v24, %v280_v6  ;;  %v441_v8 = vpop.f32.mrb[13].mxu1  ;;  %v753_v9 = vpop.f32.mrb[14].mxu0 }
 0x146   :  { %470 = vst [vmem:[#allocation8 + $0x70] sm:$0xff] %v289_v4  ;;  %v292_v10 = vadd.f32 %v753_v9, %v1031_v24  ;;  %v785_v11 = vpop.f32.mrb[14].mxu1  ;;  %v283_v12 = vpop.f32.mrb[15].mxu0 }
 0x147   :  { %468 = vst [vmem:[#allocation8 + $0x60] sm:$0xff] %v281_v7  ;;  %v681_v13 = vpack.c.bf16 %v785_v11, %v784_v5  ;;  %v284_v14 = vadd.f32 %v1031_v24, %v283_v12  ;;  %v444_v15 = vpop.f32.mrb[15].mxu1 }
 0x148   :  { %471 = vst [vmem:[#allocation8 + $0x78] sm:$0xff] %v292_v10  ;;  %v676_v16 = vpack.c.bf16 %v444_v15, %v441_v8 }
 0x149   :  { %689 = vst [vmem:[#allocation9 + $0x38] sm:$0xff] %v681_v13   ;;  %469 = vst [vmem:[#allocation8 + $0x68] sm:$0xff] %v284_v14 }
 0x14a   :  { %688 = vst [vmem:[#allocation9 + $0x30] sm:$0xff] %v676_v16  }
 0x14b   :  { %896 = shalt.err (!%p893_p0)
}
 0x14c   :  { %s897_s13 = scalar_lea.hbm %s1087_s4, 2048 }
 0x14d   :  { %p898_p1 = scmp.ne.s32.totalorder %s1087_s4, %s897_s13  ;;  %p901_p2 = scmp.lt.u32.totalorder %s897_s13, %s1087_s4 }
 0x14f   :  { %p903_p3 = pnand %p901_p2, %p898_p1 }
 0x151   :  { %906 = shalt.err (!%p903_p3)
}
 0x152   :  { %s944_s17 = smov 128   ;;  %s945_s18 = smov 8  }
 0x153   :  { %563 = dma.vmem_to_hbm [thread:$0]  %s558_s7, 2048, %s1087_s4, [#allocation4], %s944_s17, %s944_s17, %s945_s18  }
 0x154   :  { %s907_s22 = scalar_lea.vmem %s1049_s9, 1024  ;;  %p912_p5 = scmp.lt.s32.totalorder %s1049_s9, %s1049_s9 }
 0x155   :  { %p908_p4 = scmp.ne.s32.totalorder %s1049_s9, %s907_s22  ;;  %p913_p6 = scmp.lt.s32.totalorder %s907_s22, %s907_s22 }
 0x157   :  { %p914_p7 = por %p913_p6, %p912_p5 }
 0x159   :  { %p915_p8 = pnand %p914_p7, %p908_p4 }
 0x15b   :  { %918 = shalt.err (!%p915_p8)
}
 0x15c   :  { %s919_s25 = scalar_lea.hbm %s1088_s5, 1024 }
 0x15d   :  { %p920_p9 = scmp.ne.s32.totalorder %s1088_s5, %s919_s25  ;;  %p923_p10 = scmp.lt.u32.totalorder %s919_s25, %s1088_s5 }
 0x15f   :  { %p925_p11 = pnand %p923_p10, %p920_p9 }
 0x161   :  { %928 = shalt.err (!%p925_p11)
}
 0x162   :  { %575 = dma.vmem_to_hbm [thread:$0]  %s1049_s9, 1024, %s1088_s5, [#allocation10], %s939_s30, %s939_s30, %s940_s6  }
 0x163   :  { %933 = dma.done.wait [#allocation4], 2048  }
 0x164   :  { %934 = vsyncadd [#allocation4], 4294965248 }
 0x165   :  { %935 = dma.done.wait [#allocation10], 1024  }
 0x166   :  { %936 = vsyncadd [#allocation10], 4294966272 }
 0x167   :  { %582 = vsyncpa [#allocation3], 1 }
 0x168   :  { %583 = vsyncpa [#allocation6], 1 }
 0x169   :  { %584 = vsyncpa [#allocation4], 1 }
 0x16a   :  { %585 = vsyncpa [#allocation10], 1 }

</bundles_post_ra>
